<compile_context>
chip_gen: v7x
topology: tpu7x:2x2x1
jax: 0.10.0
libtpu: 0.0.40
codegen_flags: <defaults>
</compile_context>

<pallas_src>
import functools

import jax
import jax.numpy as jnp
from jax.experimental import pallas as pl
from jax.experimental.pallas import tpu as pltpu

LANE = 128


def _round_up(n, m):
    return ((n + m - 1) // m) * m


def critic_kernel(x_ref, y_ref, w1a_ref, w1b_ref, b1_ref, w2_ref, b2_ref,
                  w3_ref, b3_ref, o_ref, *, matmul_dtype):
    # fc1 (+ folded concat) + ReLU : h1 = relu(x @ w1a + y @ w1b + b1)
    x = x_ref[...].astype(matmul_dtype)
    y = y_ref[...].astype(matmul_dtype)
    h1 = jnp.dot(x, w1a_ref[...].astype(matmul_dtype),
                 preferred_element_type=jnp.float32)
    h1 = h1 + jnp.dot(y, w1b_ref[...].astype(matmul_dtype),
                      preferred_element_type=jnp.float32)
    h1 = jnp.maximum(h1 + b1_ref[...], 0.0)

    # fc2 + ReLU (lane-dense 128-wide tiles)
    h2 = jnp.dot(h1.astype(matmul_dtype), w2_ref[...].astype(matmul_dtype),
                 preferred_element_type=jnp.float32)
    h2 = jnp.maximum(h2 + b2_ref[...], 0.0)

    # fc3: N=1 -> VPU multiply + cross-lane reduction instead of MXU matmul.
    out = jnp.sum(h2 * w3_ref[...], axis=-1, keepdims=True) + b3_ref[...]
    o_ref[...] = out.astype(o_ref.dtype)


def critic_forward(x, y, kernel_params, *, batch_tile=512,
                   matmul_dtype=jnp.float32):
    """x: (B, dx), y: (B, dy). Returns (B, 1)."""
    w1a, w1b, b1, w2, b2, w3_row, b3 = kernel_params
    B, dx = x.shape
    dy = y.shape[1]
    hp = w2.shape[0]  # padded hidden (multiple of 128)

    # Single block for small batches; tile (and stream) large batches.
    tb = batch_tile if (B % batch_tile == 0) else B
    grid = (B // tb,)

    const = lambda i: (0, 0)
    in_specs = [
        pl.BlockSpec((tb, dx), lambda i: (i, 0)),   # x  (streams over batch)
        pl.BlockSpec((tb, dy), lambda i: (i, 0)),   # y  (streams over batch)
        pl.BlockSpec((dx, hp), const),              # w1a (resident)
        pl.BlockSpec((dy, hp), const),              # w1b (resident)
        pl.BlockSpec((1, hp), const),               # b1
        pl.BlockSpec((hp, hp), const),              # w2
        pl.BlockSpec((1, hp), const),               # b2
        pl.BlockSpec((1, hp), const),               # w3 (row)
        pl.BlockSpec((1, 1), const),                # b3
    ]
    out_spec = pl.BlockSpec((tb, 1), lambda i: (i, 0))

    kernel = functools.partial(critic_kernel, matmul_dtype=matmul_dtype)
    return pl.pallas_call(
        kernel,
        out_shape=jax.ShapeDtypeStruct((B, 1), jnp.float32),
        grid=grid,
        in_specs=in_specs,
        out_specs=out_spec,
        compiler_params=pltpu.CompilerParams(
            dimension_semantics=("parallel",)),
    )(x, y, w1a, w1b, b1, w2, b2, w3_row, b3)


def init_critic_params(key, input_size, hidden):
    """Deterministic init mirroring the PyTorch module:
       fc1, fc2: kaiming_normal_ (he normal, fan_in, gain=sqrt(2)), bias=0
       fc3:      xavier_uniform_, bias=0
    Weights are stored as (in_features, out_features)."""
    k1, k2, k3 = jax.random.split(key, 3)

    std1 = (2.0 / input_size) ** 0.5
    w1 = std1 * jax.random.normal(k1, (input_size, hidden), jnp.float32)
    b1 = jnp.zeros((hidden,), jnp.float32)

    std2 = (2.0 / hidden) ** 0.5
    w2 = std2 * jax.random.normal(k2, (hidden, hidden), jnp.float32)
    b2 = jnp.zeros((hidden,), jnp.float32)

    bound3 = (6.0 / (hidden + 1)) ** 0.5
    w3 = jax.random.uniform(k3, (hidden, 1), jnp.float32, -bound3, bound3)
    b3 = jnp.zeros((1,), jnp.float32)

    return (w1, b1, w2, b2, w3, b3)


def prepare_kernel_params(params, dx):
    """One-time wrapper-side prep: split w1 into the x/y halves (folds the
    concat into the kernel) and zero-pad the hidden dim to a multiple of 128
    so every intermediate tile is lane-dense. Live outputs are unchanged
    (zero columns stay zero through ReLU and contribute 0 to fc3)."""
    w1, b1, w2, b2, w3, b3 = params
    h = w2.shape[0]
    hp = _round_up(h, LANE)
    ph = hp - h

    w1p = jnp.pad(w1, ((0, 0), (0, ph)))
    w1a = w1p[:dx, :]                       # (dx, hp)
    w1b = w1p[dx:, :]                       # (dy, hp)
    b1p = jnp.pad(b1, (0, ph)).reshape(1, hp)
    w2p = jnp.pad(w2, ((0, ph), (0, ph)))   # (hp, hp)
    b2p = jnp.pad(b2, (0, ph)).reshape(1, hp)
    w3p = jnp.pad(w3[:, 0], (0, ph)).reshape(1, hp)  # row form for VPU reduce
    b3p = b3.reshape(1, 1)
    return (w1a, w1b, b1p, w2p, b2p, w3p, b3p)


def critic_ref(x, y, params):
    """Pure-JAX reference (unpadded, mirrors the PyTorch forward exactly)."""
    w1, b1, w2, b2, w3, b3 = params
    xy = jnp.concatenate([x, y], axis=1)
    h1 = jnp.maximum(xy @ w1 + b1, 0.0)
    h2 = jnp.maximum(h1 @ w2 + b2, 0.0)
    return h2 @ w3 + b3


if __name__ == "__main__":
    key = jax.random.PRNGKey(0)
    k_x, k_y, k_p = jax.random.split(key, 3)

    batch = 8
    x_dim, y_dim = 24, 8        # input_size = x_dim + y_dim = 32
    hidden = 32

    x = jax.random.normal(k_x, (batch, x_dim), jnp.float32)
    y = jax.random.normal(k_y, (batch, y_dim), jnp.float32)
    params = init_critic_params(k_p, x_dim + y_dim, hidden)
    kernel_params = prepare_kernel_params(params, x_dim)

    out = critic_forward(x, y, kernel_params)
    jax.block_until_ready(out)

    ref = critic_ref(x, y, params)
    assert out.shape == (batch, 1)
    assert jnp.allclose(out, ref, atol=1e-5, rtol=1e-5)

    print("KERNEL_OK")
</pallas_src>

<mosaic_0001>
module attributes {stable_mosaic.version = 11 : i64} {
  func.func @critic_kernel(%arg0: i32, %arg1: memref<8x24xf32, #tpu.memory_space<vmem>>, %arg2: memref<8x8xf32, #tpu.memory_space<vmem>>, %arg3: memref<24x128xf32, #tpu.memory_space<vmem>>, %arg4: memref<8x128xf32, #tpu.memory_space<vmem>>, %arg5: memref<1x128xf32, #tpu.memory_space<vmem>>, %arg6: memref<128x128xf32, #tpu.memory_space<vmem>>, %arg7: memref<1x128xf32, #tpu.memory_space<vmem>>, %arg8: memref<1x128xf32, #tpu.memory_space<vmem>>, %arg9: memref<1x1xf32, #tpu.memory_space<vmem>>, %arg10: memref<8x1xf32, #tpu.memory_space<vmem>>) attributes {dimension_semantics = [#tpu.dimension_semantics<parallel>], iteration_bounds = array<i64: 1>, scalar_prefetch = 0 : i64, scratch_operands = 0 : i64, tpu.core_type = #tpu.core_type<tc>, window_params = [{transform_indices = @transform_0, window_bounds = array<i64: 8, 24>}, {transform_indices = @transform_1, window_bounds = array<i64: 8, 8>}, {pipeline_mode = #tpu.pipeline_mode<synchronous>, transform_indices = @transform_2, window_bounds = array<i64: 24, 128>}, {pipeline_mode = #tpu.pipeline_mode<synchronous>, transform_indices = @transform_3, window_bounds = array<i64: 8, 128>}, {pipeline_mode = #tpu.pipeline_mode<synchronous>, transform_indices = @transform_4, window_bounds = array<i64: 1, 128>}, {pipeline_mode = #tpu.pipeline_mode<synchronous>, transform_indices = @transform_5, window_bounds = array<i64: 128, 128>}, {pipeline_mode = #tpu.pipeline_mode<synchronous>, transform_indices = @transform_6, window_bounds = array<i64: 1, 128>}, {pipeline_mode = #tpu.pipeline_mode<synchronous>, transform_indices = @transform_7, window_bounds = array<i64: 1, 128>}, {pipeline_mode = #tpu.pipeline_mode<synchronous>, transform_indices = @transform_8, window_bounds = array<i64: 1, 1>}, {transform_indices = @transform_9, window_bounds = array<i64: 8, 1>}]} {
    %c0 = arith.constant 0 : index
    %c0_0 = arith.constant 0 : index
    %0 = vector.load %arg1[%c0, %c0_0] : memref<8x24xf32, #tpu.memory_space<vmem>>, vector<8x24xf32>
    %c0_1 = arith.constant 0 : index
    %c0_2 = arith.constant 0 : index
    %1 = vector.load %arg2[%c0_1, %c0_2] : memref<8x8xf32, #tpu.memory_space<vmem>>, vector<8x8xf32>
    %c0_3 = arith.constant 0 : index
    %c0_4 = arith.constant 0 : index
    %2 = vector.load %arg3[%c0_3, %c0_4] : memref<24x128xf32, #tpu.memory_space<vmem>>, vector<24x128xf32>
    %cst = arith.constant dense<0.000000e+00> : vector<8x128xf32>
    %3 = tpu.matmul %0, %2, %cst {dimension_numbers = #tpu.dot_dimension_numbers<[1], [0], [0], [1], [0, 0, 1, 1], [], []>} : vector<8x24xf32>, vector<24x128xf32>, vector<8x128xf32> -> vector<8x128xf32>
    %c0_5 = arith.constant 0 : index
    %c0_6 = arith.constant 0 : index
    %4 = vector.load %arg4[%c0_5, %c0_6] : memref<8x128xf32, #tpu.memory_space<vmem>>, vector<8x128xf32>
    %cst_7 = arith.constant dense<0.000000e+00> : vector<8x128xf32>
    %5 = tpu.matmul %1, %4, %cst_7 {dimension_numbers = #tpu.dot_dimension_numbers<[1], [0], [0], [1], [0, 0, 1, 1], [], []>} : vector<8x8xf32>, vector<8x128xf32>, vector<8x128xf32> -> vector<8x128xf32>
    %6 = arith.addf %3, %5 : vector<8x128xf32>
    %c0_8 = arith.constant 0 : index
    %c0_9 = arith.constant 0 : index
    %7 = vector.load %arg5[%c0_8, %c0_9] : memref<1x128xf32, #tpu.memory_space<vmem>>, vector<1x128xf32>
    %8 = vector.broadcast %7 : vector<1x128xf32> to vector<8x128xf32>
    %9 = arith.addf %6, %8 : vector<8x128xf32>
    %cst_10 = arith.constant 0.000000e+00 : f32
    %10 = vector.broadcast %cst_10 : f32 to vector<8x128xf32>
    %11 = arith.maximumf %9, %10 : vector<8x128xf32>
    %c0_11 = arith.constant 0 : index
    %c0_12 = arith.constant 0 : index
    %12 = vector.load %arg6[%c0_11, %c0_12] : memref<128x128xf32, #tpu.memory_space<vmem>>, vector<128x128xf32>
    %cst_13 = arith.constant dense<0.000000e+00> : vector<8x128xf32>
    %13 = tpu.matmul %11, %12, %cst_13 {dimension_numbers = #tpu.dot_dimension_numbers<[1], [0], [0], [1], [0, 0, 1, 1], [], []>} : vector<8x128xf32>, vector<128x128xf32>, vector<8x128xf32> -> vector<8x128xf32>
    %c0_14 = arith.constant 0 : index
    %c0_15 = arith.constant 0 : index
    %14 = vector.load %arg7[%c0_14, %c0_15] : memref<1x128xf32, #tpu.memory_space<vmem>>, vector<1x128xf32>
    %15 = vector.broadcast %14 : vector<1x128xf32> to vector<8x128xf32>
    %16 = arith.addf %13, %15 : vector<8x128xf32>
    %cst_16 = arith.constant 0.000000e+00 : f32
    %17 = vector.broadcast %cst_16 : f32 to vector<8x128xf32>
    %18 = arith.maximumf %16, %17 : vector<8x128xf32>
    %c0_17 = arith.constant 0 : index
    %c0_18 = arith.constant 0 : index
    %19 = vector.load %arg8[%c0_17, %c0_18] : memref<1x128xf32, #tpu.memory_space<vmem>>, vector<1x128xf32>
    %20 = vector.broadcast %19 : vector<1x128xf32> to vector<8x128xf32>
    %21 = arith.mulf %18, %20 : vector<8x128xf32>
    %cst_19 = arith.constant dense<0.000000e+00> : vector<8xf32>
    %22 = vector.multi_reduction <add>, %21, %cst_19 [1] : vector<8x128xf32> to vector<8xf32>
    %23 = vector.shape_cast %22 : vector<8xf32> to vector<8x1xf32>
    %c0_20 = arith.constant 0 : index
    %c0_21 = arith.constant 0 : index
    %24 = vector.load %arg9[%c0_20, %c0_21] : memref<1x1xf32, #tpu.memory_space<vmem>>, vector<1x1xf32>
    %25 = vector.broadcast %24 : vector<1x1xf32> to vector<8x1xf32>
    %26 = arith.addf %23, %25 : vector<8x1xf32>
    %c0_22 = arith.constant 0 : index
    %c0_23 = arith.constant 0 : index
    %27 = vector.load %arg10[%c0_22, %c0_23] : memref<8x1xf32, #tpu.memory_space<vmem>>, vector<8x1xf32>
    tpu.vector_store %arg10[%c0_22, %c0_23], %26 {strides = array<i32>} : memref<8x1xf32, #tpu.memory_space<vmem>>, vector<8x1xf32>,
    return
  }
  func.func @transform_0(%arg0: i32) -> (i32, i32) {
    %c0_i32 = arith.constant 0 : i32
    %c0_i32_0 = arith.constant 0 : i32
    return %arg0, %c0_i32 : i32, i32
  }
  func.func @transform_1(%arg0: i32) -> (i32, i32) {
    %c0_i32 = arith.constant 0 : i32
    %c0_i32_0 = arith.constant 0 : i32
    return %arg0, %c0_i32 : i32, i32
  }
  func.func @transform_2(%arg0: i32) -> (i32, i32) {
    %c0_i32 = arith.constant 0 : i32
    %c0_i32_0 = arith.constant 0 : i32
    %c0_i32_1 = arith.constant 0 : i32
    return %c0_i32, %c0_i32_0 : i32, i32
  }
  func.func @transform_3(%arg0: i32) -> (i32, i32) {
    %c0_i32 = arith.constant 0 : i32
    %c0_i32_0 = arith.constant 0 : i32
    %c0_i32_1 = arith.constant 0 : i32
    return %c0_i32, %c0_i32_0 : i32, i32
  }
  func.func @transform_4(%arg0: i32) -> (i32, i32) {
    %c0_i32 = arith.constant 0 : i32
    %c0_i32_0 = arith.constant 0 : i32
    %c0_i32_1 = arith.constant 0 : i32
    return %c0_i32, %c0_i32_0 : i32, i32
  }
  func.func @transform_5(%arg0: i32) -> (i32, i32) {
    %c0_i32 = arith.constant 0 : i32
    %c0_i32_0 = arith.constant 0 : i32
    %c0_i32_1 = arith.constant 0 : i32
    return %c0_i32, %c0_i32_0 : i32, i32
  }
  func.func @transform_6(%arg0: i32) -> (i32, i32) {
    %c0_i32 = arith.constant 0 : i32
    %c0_i32_0 = arith.constant 0 : i32
    %c0_i32_1 = arith.constant 0 : i32
    return %c0_i32, %c0_i32_0 : i32, i32
  }
  func.func @transform_7(%arg0: i32) -> (i32, i32) {
    %c0_i32 = arith.constant 0 : i32
    %c0_i32_0 = arith.constant 0 : i32
    %c0_i32_1 = arith.constant 0 : i32
    return %c0_i32, %c0_i32_0 : i32, i32
  }
  func.func @transform_8(%arg0: i32) -> (i32, i32) {
    %c0_i32 = arith.constant 0 : i32
    %c0_i32_0 = arith.constant 0 : i32
    %c0_i32_1 = arith.constant 0 : i32
    return %c0_i32, %c0_i32_0 : i32, i32
  }
  func.func @transform_9(%arg0: i32) -> (i32, i32) {
    %c0_i32 = arith.constant 0 : i32
    %c0_i32_0 = arith.constant 0 : i32
    return %arg0, %c0_i32 : i32, i32
  }
}

</mosaic_0001>

<bundles_post_ra>
// kernel: tpu_custom_call.1
= control target key start
LH: loop header
LB: loop body
LE: loop exit
PB: predicated region body
PF: predicated region fallthrough
CT: control target
= control target key end

     0   :  { %s705_s0 = inlined_call_operand.hbm [shape: f32[8,24], index: 0, kind: input, shape index: {}]   ;;  %s706_s1 = inlined_call_operand.hbm [shape: f32[8,8], index: 1, kind: input, shape index: {}]   ;;  %s707_s2 = inlined_call_operand.hbm [shape: f32[24,128], index: 2, kind: input, shape index: {}]   ;;  %s708_s3 = inlined_call_operand.vmem [shape: f32[8,128], index: 3, kind: input, shape index: {}]   ;;  %s709_s4 = inlined_call_operand.vmem [shape: f32[1,128], index: 4, kind: input, shape index: {}]   ;;  %s710_s5 = inlined_call_operand.hbm [shape: f32[128,128], index: 5, kind: input, shape index: {}]   ;;  %s711_s6 = inlined_call_operand.vmem [shape: f32[1,128], index: 6, kind: input, shape index: {}]   ;;  %s712_s7 = inlined_call_operand.vmem [shape: f32[1,128], index: 7, kind: input, shape index: {}]   ;;  %s713_s8 = inlined_call_operand.<no memory space> [shape: f32[1,1], index: 8, kind: input, shape index: {}]   ;;  %s714_s9 = inlined_call_operand.vmem [shape: f32[8,1], index: 9, kind: output, shape index: {}]  }
   0x1   :  { %v14_v0 = vstv %s713_s8 }
   0x2   :  { %15 = vst [vmem:[#allocation2] sm:$0x1] %v14_v0 }
   0x3   :  { %16 = vsyncpa [#allocation4], 0 }
   0x4   :  { %17 = vsyncpa [#allocation6], 0 }
   0x5   :  { %18 = vsyncpa [#allocation9], 0  ;;  %s577_s11 = smov [#allocation5]   ;;  %s578_s13 = smov [#allocation3]  }
   0x6   :  { %s35_s12 = sshll.u32 %s577_s11, 4  ;;  %s25_s14 = sshll.u32 %s578_s13, 4  ;;  %s36_s12 = int_to_ptr.vmem [resolvable:$true] %s35_s12  ;;  %s26_s14 = int_to_ptr.vmem [resolvable:$true] %s25_s14 }
   0x7   :  { %s483_s17 = scalar_lea.hbm %s706_s1, 128 }
   0x8   :  { %p484_p0 = scmp.ne.s32.totalorder %s706_s1, %s483_s17  ;;  %p487_p1 = scmp.lt.u32.totalorder %s483_s17, %s706_s1 }
   0xa   :  { %p489_p2 = pnand %p487_p1, %p484_p0 }
   0xc   :  { %492 = shalt.err (!%p489_p2)
}
   0xd   :  { %s493_s21 = scalar_lea.vmem %s36_s12, 128  ;;  %p498_p4 = scmp.lt.s32.totalorder %s36_s12, %s36_s12 }
   0xe   :  { %p494_p3 = scmp.ne.s32.totalorder %s36_s12, %s493_s21  ;;  %p499_p5 = scmp.lt.s32.totalorder %s493_s21, %s493_s21 }
  0x10   :  { %p500_p6 = por %p499_p5, %p498_p4 }
  0x12   :  { %p501_p7 = pnand %p500_p6, %p494_p3 }
  0x14   :  { %504 = shalt.err (!%p501_p7)
}
  0x15   :  { %38 = dma.hbm_to_vmem [thread:$0]  %s706_s1, 128, %s36_s12, [#allocation6]  }
  0x16   :  { %s505_s26 = scalar_lea.hbm %s705_s0, 128 }
  0x17   :  { %p506_p8 = scmp.ne.s32.totalorder %s705_s0, %s505_s26  ;;  %p509_p9 = scmp.lt.u32.totalorder %s505_s26, %s705_s0 }
  0x19   :  { %p511_p10 = pnand %p509_p9, %p506_p8 }
  0x1b   :  { %514 = shalt.err (!%p511_p10)
}
  0x1c   :  { %s515_s10 = scalar_lea.vmem %s26_s14, 128  ;;  %p520_p12 = scmp.lt.s32.totalorder %s26_s14, %s26_s14 }
  0x1d   :  { %p516_p11 = scmp.ne.s32.totalorder %s26_s14, %s515_s10  ;;  %p521_p13 = scmp.lt.s32.totalorder %s515_s10, %s515_s10 }
  0x1f   :  { %p522_p0 = por %p521_p13, %p520_p12 }
  0x21   :  { %p523_p1 = pnand %p522_p0, %p516_p11 }
  0x23   :  { %526 = shalt.err (!%p523_p1)
}
  0x24   :  { %28 = dma.hbm_to_vmem [thread:$0]  %s705_s0, 128, %s26_s14, [#allocation4]  }
  0x25   :  { %s579_s12 = smov [#allocation7]   ;;  %s527_s17 = scalar_lea.hbm %s707_s2, 384 }
  0x26   :  { %s44_s13 = sshll.u32 %s579_s12, 4  ;;  %p528_p2 = scmp.ne.s32.totalorder %s707_s2, %s527_s17  ;;  %s45_s13 = int_to_ptr.vmem [resolvable:$true] %s44_s13 }
  0x27   :  { %p531_p3 = scmp.lt.u32.totalorder %s527_s17, %s707_s2 }
  0x29   :  { %p533_p4 = pnand %p531_p3, %p528_p2 }
  0x2b   :  { %536 = shalt.err (!%p533_p4)
}
  0x2c   :  { %s537_s21 = scalar_lea.vmem %s45_s13, 384  ;;  %p542_p6 = scmp.lt.s32.totalorder %s45_s13, %s45_s13 }
  0x2d   :  { %p538_p5 = scmp.ne.s32.totalorder %s45_s13, %s537_s21  ;;  %p543_p7 = scmp.lt.s32.totalorder %s537_s21, %s537_s21 }
  0x2f   :  { %p544_p8 = por %p543_p7, %p542_p6 }
  0x31   :  { %p545_p9 = pnand %p544_p8, %p538_p5 }
  0x33   :  { %548 = shalt.err (!%p545_p9)
}
  0x34   :  { %s580_s0 = smov 128   ;;  %s581_s14 = smov 8  }
  0x35   :  { %50 = dma.hbm_to_vmem [thread:$0]  %s707_s2, 384, %s45_s13, [#allocation6], %s580_s0, %s580_s0, %s581_s14  }
  0x36   :  { %s582_s24 = smov [#allocation8]   ;;  %s549_s28 = scalar_lea.hbm %s710_s5, 2048 }
  0x37   :  { %s60_s25 = sshll.u32 %s582_s24, 4  ;;  %p550_p10 = scmp.ne.s32.totalorder %s710_s5, %s549_s28  ;;  %s61_s25 = int_to_ptr.vmem [resolvable:$true] %s60_s25 }
  0x38   :  { %p553_p11 = scmp.lt.u32.totalorder %s549_s28, %s710_s5 }
  0x3a   :  { %p555_p12 = pnand %p553_p11, %p550_p10 }
  0x3c   :  { %558 = shalt.err (!%p555_p12)
}
  0x3d   :  { %s559_s11 = scalar_lea.vmem %s61_s25, 2048  ;;  %p564_p0 = scmp.lt.s32.totalorder %s61_s25, %s61_s25 }
  0x3e   :  { %p560_p13 = scmp.ne.s32.totalorder %s61_s25, %s559_s11  ;;  %p565_p1 = scmp.lt.s32.totalorder %s559_s11, %s559_s11 }
  0x40   :  { %p566_p2 = por %p565_p1, %p564_p0 }
  0x42   :  { %p567_p3 = pnand %p566_p2, %p560_p13 }
  0x44   :  { %570 = shalt.err (!%p567_p3)
}
  0x45   :  { %66 = dma.hbm_to_vmem [thread:$0]  %s710_s5, 2048, %s61_s25, [#allocation9], %s580_s0, %s580_s0, %s581_s14  }
  0x46   :  { %571 = dma.done.wait [#allocation4], 128  }
  0x47   :  { %572 = vsyncadd [#allocation4], 4294967168 }
  0x48   :  { %573 = dma.done.wait [#allocation6], 512  }
  0x49   :  { %574 = vsyncadd [#allocation6], 4294966784 }
  0x4a   :  { %575 = dma.done.wait [#allocation9], 2048  }
  0x4b   :  { %576 = vsyncadd [#allocation9], 4294965248  ;;  %v583_v1 = vmov 0.0   ;;  %vm584_vm0 = vmmov 0   ;;  %v585_v2 = vmov 0.0|0.0   ;;  %vm91_vm1 = vcmask 64512  }
  0x4c   :  { %398 = vmatprep.subr.mxu1 %v583_v1  ;;  %400 = vmatprep.mubr.msk.f32.mxu1 %vm584_vm0, %v583_v1  ;;  %v90_v3 = vld [vmem:[%s708_s3] sm:$0xff]  ;;  %v86_v4 = vld [vmem:[#allocation5] sm:$0xff]  ;;  %v87_v5 = vld [vmem:[#allocation7] sm:$0xff]  ;;  %vm165_vm2 = vcmask 195584   ;;  %vm360_vm3 = vcmask 7168  }
  0x4d   :  { %450 = vmatprep.subr.bf16.mxu0 %v585_v2  ;;  %444 = vmatprep.mubr.msk.f32.mxu0 %vm584_vm0, %v583_v1  ;;  %v88_v6 = vld [vmem:[#allocation7 + $0x8] sm:$0xff]  ;;  %v248_v8 = vld [vmem:[#allocation8] sm:$0xff]  ;;  %v249_v9 = vld [vmem:[#allocation8 + $0x8] sm:$0xff] }
  0x4e   :  { %399 = vmatpush3.msra.mxu1 %v90_v3  ;;  %v448_v7 = vpack.c.bf16 %v88_v6, %v87_v5  ;;  %v250_v10 = vld [vmem:[#allocation8 + $0x10] sm:$0xff]  ;;  %v451_v11 = vpack.c.bf16 %v249_v9, %v248_v8  ;;  %v251_v12 = vld [vmem:[#allocation8 + $0x18] sm:$0xff]  ;;  %v252_v16 = vld [vmem:[#allocation8 + $0x20] sm:$0xff] }
  0x4f   :  { %401 = vmatmul.mubr.msk.f32.vlgmr.msra.gmra.mrb[0].mxu1 %vm91_vm1, %v86_v4  ;;  %447 = vmatprep.subr.bf16.mxu1 %v585_v2  ;;  %v89_v13 = vld [vmem:[#allocation7 + $0x10] sm:$0xff]  ;;  %v454_v14 = vpack.c.bf16 %v251_v12, %v250_v10  ;;  %v253_v17 = vld [vmem:[#allocation8 + $0x28] sm:$0xff]  ;;  %v254_v19 = vld [vmem:[#allocation8 + $0x30] sm:$0xff] }
  0x50   :  { %409 = vmatprep.mubr.msk.f32.mxu1 %vm584_vm0, %v583_v1  ;;  %449 = vmatpush3.bf16.msra.mxu1 %v448_v7  ;;  %v85_v15 = vld [vmem:[#allocation3] sm:$0xff]  ;;  %v457_v18 = vpack.c.bf16 %v253_v17, %v252_v16  ;;  %v256_v22 = vld [vmem:[#allocation8 + $0x40] sm:$0xff]  ;;  %v257_v23 = vld [vmem:[#allocation8 + $0x48] sm:$0xff] }
  0x51   :  { %407 = vmatprep.subr.mxu1 %v583_v1  ;;  %452 = vmatpush3.bf16.msra.mxu0 %v451_v11  ;;  %v255_v20 = vld [vmem:[#allocation8 + $0x38] sm:$0xff]  ;;  %v463_v24 = vpack.c.bf16 %v257_v23, %v256_v22  ;;  %v258_v25 = vld [vmem:[#allocation8 + $0x50] sm:$0xff]  ;;  %v260_v28 = vld [vmem:[#allocation8 + $0x60] sm:$0xff] }
  0x52   :  { %453 = vmatprep.subr.bf16.mxu0 %v585_v2  ;;  %v460_v21 = vpack.c.bf16 %v255_v20, %v254_v19  ;;  %v259_v26 = vld [vmem:[#allocation8 + $0x58] sm:$0xff]  ;;  %v261_v29 = vld [vmem:[#allocation8 + $0x68] sm:$0xff]  ;;  %v262_v31 = vld [vmem:[#allocation8 + $0x70] sm:$0xff] }
  0x53   :  { %v466_v27 = vpack.c.bf16 %v259_v26, %v258_v25  ;;  %v469_v30 = vpack.c.bf16 %v261_v29, %v260_v28  ;;  %v263_v32 = vld [vmem:[#allocation8 + $0x78] sm:$0xff]  ;;  %v371_v37 = vld [vmem:[%s709_s4] ss:$0 sm:$0xff] }
  0x54   :  { %408 = vmatpush3.msra.mxu1 %v89_v13  ;;  %v472_v33 = vpack.c.bf16 %v263_v32, %v262_v31  ;;  %v372_v42 = vld [vmem:[%s711_s6] ss:$0 sm:$0xff] }
  0x55   :  { %410 = vmatmul.mubr.msk.f32.vlgmr.msra.gmra.mrb[2].mxu1 %vm165_vm2, %v85_v15  ;;  %455 = vmatpush3.bf16.msra.mxu0 %v454_v14  ;;  %v373_v46 = vld [vmem:[%s712_s7] ss:$0 sm:$0xff] }
  0x56   :  { %456 = vmatprep.subr.bf16.mxu0 %v585_v2  ;;  %v374_v49 = vld [vmem:[#allocation2] ss:$0 sm:$0xff] }
  0x59   :  { %458 = vmatpush3.bf16.msra.mxu0 %v457_v18 }
  0x5a   :  { %459 = vmatprep.subr.bf16.mxu0 %v585_v2 }
  0x5d   :  { %461 = vmatpush3.bf16.msra.mxu0 %v460_v21 }
  0x5e   :  { %462 = vmatprep.subr.bf16.mxu0 %v585_v2 }
  0x61   :  { %464 = vmatpush3.bf16.msra.mxu0 %v463_v24 }
  0x62   :  { %465 = vmatprep.subr.bf16.mxu0 %v585_v2 }
  0x65   :  { %467 = vmatpush3.bf16.msra.mxu0 %v466_v27 }
  0x66   :  { %468 = vmatprep.subr.bf16.mxu0 %v585_v2 }
  0x69   :  { %470 = vmatpush3.bf16.msra.mxu0 %v469_v30 }
  0x6a   :  { %471 = vmatprep.subr.bf16.mxu0 %v585_v2 }
  0x6d   :  { %473 = vmatpush3.bf16.msra.mxu0 %v472_v33 }
 0x122   :  { %v161_v34 = vpop.f32.mrb[0].mxu1 }
 0x123   :  { %v402_v35 = vpop.f32.mrb[1].mxu1 }
 0x128   :  { %v235_v36 = vpop.f32.mrb[2].mxu1 }
 0x129   :  { %v236_v38 = vadd.f32 %v235_v36, %v161_v34  ;;  %v411_v39 = vpop.f32.mrb[3].mxu1 }
 0x12b   :  { %v246_v40 = vadd.f32 %v371_v37, %v236_v38 }
 0x12d   :  { %v247_v41 = vmax.f32 %v246_v40, 0.0 }
 0x12f   :  { %445 = vmatmul.mubr.f32.vlgmr.msra.gmra.mrb[0].mxu0 %v247_v41 }
 0x202   :  { %v337_v43 = vpop.f32.mrb[0].mxu0 }
 0x203   :  { %v338_v44 = vadd.f32 %v372_v42, %v337_v43  ;;  %v446_v45 = vpop.f32.mrb[1].mxu0 }
 0x205   :  { %v341_v47 = vmax.f32 %v338_v44, 0.0 }
 0x207   :  { %v349_v48 = vmul.f32 %v373_v46, %v341_v47 }
 0x209   :  { %350 = vadd.xlane.f32.xlu0 %v349_v48 }
 0x296   :  { %v351_v50 = vpop.xlane.xlu0 %350 }
 0x297   :  { %v359_v51 = vadd.f32 %v374_v49, %v351_v50 }
 0x299   :  { %361 = vst.msk [vmem:[%s714_s9] sm:$0xff] %vm360_vm3, %v359_v51 }
 0x29a   :  { %366 = vsyncpa [#allocation4], 1 }
 0x29b   :  { %367 = vsyncpa [#allocation6], 1 }
 0x29c   :  { %368 = vsyncpa [#allocation9], 1 }

</bundles_post_ra>
